<compile_context>
chip_gen: v7x
topology: tpu7x:2x2x1
jax: 0.10.0
libtpu: 0.0.40
codegen_flags: <defaults>
</compile_context>

<pallas_src>
import functools
import math

import jax
import jax.numpy as jnp
from jax.experimental import pallas as pl
from jax.experimental.pallas import tpu as pltpu


# ---------------------------------------------------------------------------
# Kernels
# ---------------------------------------------------------------------------

def _cond_aug_kernel_slab(x_ref, w_ref, b_ref, noise_ref, out_ref, *,
                          latent_size, eps, compute_dtype):
    # x cast happens on-chip (VPU) right before the MXU push; no wrapper cast.
    x = x_ref[...].astype(compute_dtype)
    combined = (jnp.dot(x, w_ref[...], preferred_element_type=jnp.float32)
                + b_ref[...])
    mus = combined[:, :latent_size]
    sigmas = (jnp.maximum(combined[:, latent_size:], jnp.float32(0.0))
              + jnp.float32(eps))
    c_not_hat = noise_ref[...].astype(jnp.float32) * sigmas + mus
    # Three direct slice stores into the (TB, 3L) slab -- no concatenate temp,
    # no lane-shuffle copies.  The writeback DMA is still one rectangular tile.
    out_ref[:, :latent_size] = c_not_hat.astype(out_ref.dtype)
    out_ref[:, latent_size:2 * latent_size] = mus.astype(out_ref.dtype)
    out_ref[:, 2 * latent_size:] = sigmas.astype(out_ref.dtype)


def _cond_aug_kernel_split(x_ref, w_ref, b_ref, noise_ref,
                           c_ref, mu_ref, sig_ref, *,
                           latent_size, eps, compute_dtype):
    x = x_ref[...].astype(compute_dtype)
    combined = (jnp.dot(x, w_ref[...], preferred_element_type=jnp.float32)
                + b_ref[...])
    mus = combined[:, :latent_size]
    sigmas = (jnp.maximum(combined[:, latent_size:], jnp.float32(0.0))
              + jnp.float32(eps))
    c_not_hat = noise_ref[...].astype(jnp.float32) * sigmas + mus
    # Three lane-dense outputs (L % 128 == 0): unmasked stores, no wrapper
    # slicing / extra HBM round trip.
    c_ref[...] = c_not_hat.astype(c_ref.dtype)
    mu_ref[...] = mus.astype(mu_ref.dtype)
    sig_ref[...] = sigmas.astype(sig_ref.dtype)


# ---------------------------------------------------------------------------
# Parameter prep (one-time, hoisted out of the per-call hot path)
# ---------------------------------------------------------------------------

def prepare_condition_augmentor_params(weight, bias, *, latent_size,
                                       use_eql=True, compute_dtype=None):
    """weight: torch.nn.Linear layout (2*latent, input); bias: (2*latent,).
    Returns (w_t, b): w_t pre-scaled by the equalized-LR He constant and
    pre-transposed to (input, 2*latent); b reshaped to (1, 2*latent) f32."""
    two_l, input_size = weight.shape
    assert two_l == 2 * latent_size, "weight must be (2*latent, input)"
    if compute_dtype is None:
        # bf16 operands (f32 accumulate) only pay off at generator-scale widths.
        compute_dtype = (jnp.bfloat16
                         if (input_size >= 256 and latent_size >= 128)
                         else jnp.float32)
    scale = math.sqrt(2.0 / input_size) if use_eql else 1.0
    w_t = (weight.astype(jnp.float32) * jnp.float32(scale)).T.astype(compute_dtype)
    b = bias.astype(jnp.float32).reshape(1, 2 * latent_size)
    return w_t, b


# ---------------------------------------------------------------------------
# Generation-aware sizing
# ---------------------------------------------------------------------------

def _tpu_generation():
    try:
        kind = jax.devices()[0].device_kind.lower()
    except Exception:
        return None
    if "tpu" not in kind:
        return None
    for tag, gen in (("v7", "v7x"), ("v6", "v6e"), ("v5", "v5")):
        if tag in kind:
            return gen
    return None


def _vmem_limit_for(gen):
    if gen == "v7x":
        return 40 * 1024 * 1024     # 64 MiB physical per TensorCore -> headroom
    if gen in ("v6e", "v5"):
        return 96 * 1024 * 1024     # 128 MiB physical VMEM
    return 32 * 1024 * 1024         # unknown backend / interpret: conservative


def _auto_block_b(batch, input_size, latent_size, *, x_itemsize, w_itemsize,
                  out_itemsize, vmem_limit_bytes, row_multiple):
    # Weight + bias are VMEM-resident and (by default) double-buffered.
    resident = 2 * (input_size * 2 * latent_size * w_itemsize
                    + 2 * latent_size * 4)
    headroom = 4 * 1024 * 1024
    budget = max(vmem_limit_bytes - resident - headroom, 2 * 1024 * 1024)
    per_row = (2 * input_size * x_itemsize             # x stream (double-buffered)
               + 2 * latent_size * 4                   # noise stream (double-buffered)
               + 2 * 3 * latent_size * out_itemsize    # outputs (double-buffered)
               + 5 * latent_size * 4)                  # in-kernel f32 temporaries
    tb = min(batch, 2048, max(row_multiple, budget // max(per_row, 1)))
    if tb >= batch:
        return batch
    return max(row_multiple, tb - (tb % row_multiple))


# ---------------------------------------------------------------------------
# Wrapper
# ---------------------------------------------------------------------------

def condition_augmentor(x, w_t, b, noise, *, latent_size, eps=1e-12,
                        block_b=None, out_dtype=jnp.float32):
    """x: (B, input_size) in its native dtype (cast happens on-chip);
    w_t: (input_size, 2*latent) pre-scaled/pre-transposed; b: (1, 2*latent);
    noise: (B, latent) ~ N(0, 1).  Returns (c_not_hat, mus, sigmas)."""
    B, input_size = x.shape
    assert latent_size % 2 == 0, "Latent manifold has odd number of dimensions"
    assert w_t.shape == (input_size, 2 * latent_size)
    assert b.shape == (1, 2 * latent_size)
    assert noise.shape == (B, latent_size)

    compute_dtype = w_t.dtype
    gen = _tpu_generation()
    vmem_limit = _vmem_limit_for(gen)
    row_multiple = 16 if compute_dtype == jnp.bfloat16 else 8

    if block_b is None:
        block_b = _auto_block_b(
            B, input_size, latent_size,
            x_itemsize=jnp.dtype(x.dtype).itemsize,
            w_itemsize=jnp.dtype(compute_dtype).itemsize,
            out_itemsize=jnp.dtype(out_dtype).itemsize,
            vmem_limit_bytes=vmem_limit,
            row_multiple=row_multiple)
    grid = (pl.cdiv(B, block_b),)

    # v7x: shard batch tiles across the two TensorCores; elsewhere "parallel".
    batch_sem = (pltpu.CORE_PARALLEL
                 if (gen == "v7x" and grid[0] >= 2 and grid[0] % 2 == 0)
                 else "parallel")

    in_specs = [
        # batch-tiled activations (double-buffered by the pipeline)
        pl.BlockSpec((block_b, input_size), lambda i: (i, 0)),
        # weight / bias stay VMEM-resident across the whole grid
        # TODO(synk): pipeline_mode=pl.Buffered(1) here would reclaim one
        # weight-sized buffer; omitted for interpret-mode portability.
        pl.BlockSpec((input_size, 2 * latent_size), lambda i: (0, 0)),
        pl.BlockSpec((1, 2 * latent_size), lambda i: (0, 0)),
        # batch-tiled reparameterization noise
        pl.BlockSpec((block_b, latent_size), lambda i: (i, 0)),
    ]
    compiler_params = pltpu.CompilerParams(
        dimension_semantics=(batch_sem,),
        vmem_limit_bytes=vmem_limit,
    )
    # NOTE: the last partial batch tile computes on padded rows; Pallas drops
    # the out-of-bounds writeback, so no masking is needed (or wanted).

    if latent_size % 128 == 0:
        # Generator scale: three separate lane-dense outputs, no wrapper slicing.
        kernel = functools.partial(_cond_aug_kernel_split,
                                   latent_size=latent_size, eps=eps,
                                   compute_dtype=compute_dtype)
        out_shape = [jax.ShapeDtypeStruct((B, latent_size), out_dtype)] * 3
        out_specs = [pl.BlockSpec((block_b, latent_size), lambda i: (i, 0))] * 3
        c_not_hat, mus, sigmas = pl.pallas_call(
            kernel,
            out_shape=out_shape,
            grid_spec=pltpu.PrefetchScalarGridSpec(
                num_scalar_prefetch=0, grid=grid,
                in_specs=in_specs, out_specs=out_specs),
            compiler_params=compiler_params,
        )(x, w_t, b, noise)
        return c_not_hat, mus, sigmas

    # Toy / non-128-aligned latent: one (B, 3L) slab written with slice stores,
    # sliced apart in the wrapper.
    kernel = functools.partial(_cond_aug_kernel_slab,
                               latent_size=latent_size, eps=eps,
                               compute_dtype=compute_dtype)
    out = pl.pallas_call(
        kernel,
        out_shape=jax.ShapeDtypeStruct((B, 3 * latent_size), out_dtype),
        grid_spec=pltpu.PrefetchScalarGridSpec(
            num_scalar_prefetch=0, grid=grid,
            in_specs=in_specs,
            out_specs=pl.BlockSpec((block_b, 3 * latent_size), lambda i: (i, 0))),
        compiler_params=compiler_params,
    )(x, w_t, b, noise)
    c_not_hat = out[:, :latent_size]
    mus = out[:, latent_size:2 * latent_size]
    sigmas = out[:, 2 * latent_size:]
    return c_not_hat, mus, sigmas


# ---------------------------------------------------------------------------
# Self-test
# ---------------------------------------------------------------------------

if __name__ == "__main__":
    # Small shapes consistent with the module: batch=16, input=32, latent=32.
    B, INPUT_SIZE, LATENT_SIZE = 16, 32, 32

    key = jax.random.PRNGKey(0)
    k_x, k_w, k_n = jax.random.split(key, 3)

    x = jax.random.normal(k_x, (B, INPUT_SIZE), dtype=jnp.float32)
    # _equalized_linear init: weight ~ N(0, 1) in torch Linear layout, bias = 0.
    weight = jax.random.normal(k_w, (2 * LATENT_SIZE, INPUT_SIZE), dtype=jnp.float32)
    bias = jnp.zeros((2 * LATENT_SIZE,), dtype=jnp.float32)
    # Reparameterization noise (host-generated, grid-invariant, reproducible).
    noise = jax.random.normal(k_n, (B, LATENT_SIZE), dtype=jnp.float32)

    # One-time parameter prep (scale + transpose hoisted out of the hot path).
    w_t, b = prepare_condition_augmentor_params(
        weight, bias, latent_size=LATENT_SIZE, use_eql=True)

    # block_b=8 -> grid=(2,) so the batch-tiled pipeline is actually exercised.
    c_not_hat, mus, sigmas = condition_augmentor(
        x, w_t, b, noise, latent_size=LATENT_SIZE, block_b=8)
    jax.block_until_ready((c_not_hat, mus, sigmas))

    # Pure-JAX reference (identical math, including the noise).
    scale = math.sqrt(2.0 / INPUT_SIZE)
    combined = x @ (weight * scale).T + bias
    mus_ref = combined[:, :LATENT_SIZE]
    sig_ref = jnp.maximum(combined[:, LATENT_SIZE:], 0.0) + 1e-12
    c_ref = noise * sig_ref + mus_ref

    assert jnp.allclose(mus, mus_ref, atol=1e-4, rtol=1e-4), "mus mismatch"
    assert jnp.allclose(sigmas, sig_ref, atol=1e-4, rtol=1e-4), "sigmas mismatch"
    assert jnp.allclose(c_not_hat, c_ref, atol=1e-4, rtol=1e-4), "c_not_hat mismatch"
    assert bool(jnp.all(sigmas > 0.0)), "sigmas must be strictly positive"

    print("KERNEL_OK")
</pallas_src>

<mosaic_0001>
module attributes {stable_mosaic.version = 11 : i64} {
  func.func @_cond_aug_kernel_slab(%arg0: i32, %arg1: memref<8x32xf32, #tpu.memory_space<vmem>>, %arg2: memref<32x64xf32, #tpu.memory_space<vmem>>, %arg3: memref<1x64xf32, #tpu.memory_space<vmem>>, %arg4: memref<8x32xf32, #tpu.memory_space<vmem>>, %arg5: memref<8x96xf32, #tpu.memory_space<vmem>>) attributes {dimension_semantics = [#tpu.dimension_semantics<parallel>], iteration_bounds = array<i64: 2>, scalar_prefetch = 0 : i64, scratch_operands = 0 : i64, tpu.core_type = #tpu.core_type<tc>, window_params = [{transform_indices = @transform_0, window_bounds = array<i64: 8, 32>}, {pipeline_mode = #tpu.pipeline_mode<synchronous>, transform_indices = @transform_1, window_bounds = array<i64: 32, 64>}, {pipeline_mode = #tpu.pipeline_mode<synchronous>, transform_indices = @transform_2, window_bounds = array<i64: 1, 64>}, {transform_indices = @transform_3, window_bounds = array<i64: 8, 32>}, {transform_indices = @transform_4, window_bounds = array<i64: 8, 96>}]} {
    %c0 = arith.constant 0 : index
    %c0_0 = arith.constant 0 : index
    %0 = vector.load %arg1[%c0, %c0_0] : memref<8x32xf32, #tpu.memory_space<vmem>>, vector<8x32xf32>
    %c0_1 = arith.constant 0 : index
    %c0_2 = arith.constant 0 : index
    %1 = vector.load %arg2[%c0_1, %c0_2] : memref<32x64xf32, #tpu.memory_space<vmem>>, vector<32x64xf32>
    %cst = arith.constant dense<0.000000e+00> : vector<8x64xf32>
    %2 = tpu.matmul %0, %1, %cst {dimension_numbers = #tpu.dot_dimension_numbers<[1], [0], [0], [1], [0, 0, 1, 1], [], []>} : vector<8x32xf32>, vector<32x64xf32>, vector<8x64xf32> -> vector<8x64xf32>
    %c0_3 = arith.constant 0 : index
    %c0_4 = arith.constant 0 : index
    %3 = vector.load %arg3[%c0_3, %c0_4] : memref<1x64xf32, #tpu.memory_space<vmem>>, vector<1x64xf32>
    %4 = vector.broadcast %3 : vector<1x64xf32> to vector<8x64xf32>
    %5 = arith.addf %2, %4 : vector<8x64xf32>
    %6 = vector.extract_strided_slice %5 {offsets = [0, 0], sizes = [8, 32], strides = [1, 1]} : vector<8x64xf32> to vector<8x32xf32>
    %7 = vector.extract_strided_slice %5 {offsets = [0, 32], sizes = [8, 32], strides = [1, 1]} : vector<8x64xf32> to vector<8x32xf32>
    %cst_5 = arith.constant 0.000000e+00 : f32
    %8 = vector.broadcast %cst_5 : f32 to vector<8x32xf32>
    %9 = arith.maximumf %7, %8 : vector<8x32xf32>
    %cst_6 = arith.constant 9.99999996E-13 : f32
    %10 = vector.broadcast %cst_6 : f32 to vector<8x32xf32>
    %11 = arith.addf %9, %10 : vector<8x32xf32>
    %c0_7 = arith.constant 0 : index
    %c0_8 = arith.constant 0 : index
    %12 = vector.load %arg4[%c0_7, %c0_8] : memref<8x32xf32, #tpu.memory_space<vmem>>, vector<8x32xf32>
    %13 = arith.mulf %12, %11 : vector<8x32xf32>
    %14 = arith.addf %13, %6 : vector<8x32xf32>
    %c0_9 = arith.constant 0 : index
    %c0_10 = arith.constant 0 : index
    %15 = vector.load %arg5[%c0_9, %c0_10] : memref<8x96xf32, #tpu.memory_space<vmem>>, vector<8x32xf32>
    tpu.vector_store %arg5[%c0_9, %c0_10], %14 {strides = array<i32>} : memref<8x96xf32, #tpu.memory_space<vmem>>, vector<8x32xf32>,
    %c0_11 = arith.constant 0 : index
    %c32 = arith.constant 32 : index
    %16 = vector.load %arg5[%c0_11, %c32] : memref<8x96xf32, #tpu.memory_space<vmem>>, vector<8x32xf32>
    tpu.vector_store %arg5[%c0_11, %c32], %6 {strides = array<i32>} : memref<8x96xf32, #tpu.memory_space<vmem>>, vector<8x32xf32>,
    %c0_12 = arith.constant 0 : index
    %c64 = arith.constant 64 : index
    %17 = vector.load %arg5[%c0_12, %c64] : memref<8x96xf32, #tpu.memory_space<vmem>>, vector<8x32xf32>
    tpu.vector_store %arg5[%c0_12, %c64], %11 {strides = array<i32>} : memref<8x96xf32, #tpu.memory_space<vmem>>, vector<8x32xf32>,
    return
  }
  func.func @transform_0(%arg0: i32) -> (i32, i32) {
    %c0_i32 = arith.constant 0 : i32
    %c0_i32_0 = arith.constant 0 : i32
    return %arg0, %c0_i32 : i32, i32
  }
  func.func @transform_1(%arg0: i32) -> (i32, i32) {
    %c0_i32 = arith.constant 0 : i32
    %c0_i32_0 = arith.constant 0 : i32
    %c0_i32_1 = arith.constant 0 : i32
    return %c0_i32, %c0_i32_0 : i32, i32
  }
  func.func @transform_2(%arg0: i32) -> (i32, i32) {
    %c0_i32 = arith.constant 0 : i32
    %c0_i32_0 = arith.constant 0 : i32
    %c0_i32_1 = arith.constant 0 : i32
    return %c0_i32, %c0_i32_0 : i32, i32
  }
  func.func @transform_3(%arg0: i32) -> (i32, i32) {
    %c0_i32 = arith.constant 0 : i32
    %c0_i32_0 = arith.constant 0 : i32
    return %arg0, %c0_i32 : i32, i32
  }
  func.func @transform_4(%arg0: i32) -> (i32, i32) {
    %c0_i32 = arith.constant 0 : i32
    %c0_i32_0 = arith.constant 0 : i32
    return %arg0, %c0_i32 : i32, i32
  }
}

</mosaic_0001>

<bundles_post_ra>
// kernel: tpu_custom_call.1
= control target key start
LH: loop header
LB: loop body
LE: loop exit
PB: predicated region body
PF: predicated region fallthrough
CT: control target
= control target key end

     0   :  { %9 = vsyncpa [#allocation3], 0  ;;  %s1046_s0 = inlined_call_operand.hbm [shape: f32[16,32], index: 0, kind: input, shape index: {}]   ;;  %s1047_s1 = inlined_call_operand.hbm [shape: f32[32,64], index: 1, kind: input, shape index: {}]   ;;  %s1048_s2 = inlined_call_operand.vmem [shape: f32[1,64], index: 2, kind: input, shape index: {}]   ;;  %s1049_s3 = inlined_call_operand.hbm [shape: f32[16,32], index: 3, kind: input, shape index: {}]   ;;  %s1050_s4 = inlined_call_operand.hbm [shape: f32[16,96], index: 4, kind: output, shape index: {}]  }
   0x1   :  { %11 = vsyncpa [#allocation3 + $0x1], 0 }
   0x2   :  { %12 = vsyncpa [#allocation6], 0 }
   0x3   :  { %13 = vsyncpa [#allocation4], 0 }
   0x4   :  { %15 = vsyncpa [#allocation4 + $0x1], 0  ;;  %s793_s15 = smov 0   ;;  %s795_s16 = smov 0  }
   0x5   :  { %s797_s17 = smov 0   ;;  %s799_s18 = smov 0  }
   0x6 LB: > { %s814_s19 = sadd.s32 1, %s755_s18   ;;  %s28_s20 = sadd.s32 1, %s751_s17  ;;  %s755_s18 = sphi %s799_s18, %s1073_s18   ;;  %s751_s17 = sphi %s797_s17, %s1072_s17   ;;  %s747_s16 = sphi %s795_s16, %s1071_s16   ;;  %s743_s15 = sphi %s793_s15, %s1070_s15  }
   0x7   : > { %s25_s21 = ssub.s32 %s755_s18, %s814_s19  ;;  %p35_p0 = scmp.ne.s32.totalorder %s751_s17, %s747_s16 }
   0x8   : > { %p26_p1 = scmp.eq.s32.totalorder %s25_s21, 0  ;;  %p36_p2 = scmp.eq.s32.totalorder %s755_s18, 0 }
   0x9   : > { %p550_p4 = scmp.lt.s32.totalorder %s755_s18, 2  ;;  %s175_s23 = sand.u32 1, %s755_s18  }
   0xa   : > { %s825_s22 = scalar_select %p26_p1, %s751_s17, %s28_s20  }
   0xb   : > { %p37_p5 = por %p36_p2, %p35_p0  ;;  %s177_s24 = sand.u32 1, %s751_s17  }
   0xc   : > { %s832_s25 = sshll.u32 %s177_s24, 3  ;;  %s488_s26 = sshll.u32 %s755_s18, 7 }
   0xd   : > { %s840_s29 = scalar_lea.hbm %s1046_s0, %s488_s26  ;;  %s179_s30 = scalar_lea.vmem [#allocation2], %s832_s25 }
   0xe   : > { %s186_s5 = sshll.u32 %s179_s30, 4  ;;  %p843_p6 = pnand %p550_p4, %p37_p5  ;;  %s847_s5 = int_to_ptr.vmem [resolvable:$true] %s186_s5 }
   0xf   : > { %s849_s7 = scalar_lea.sflag [#allocation3], %s175_s23  ;;  %s593_s8 = scalar_lea.hbm %s840_s29, 128 }
  0x10   : > { %p594_p7 = scmp.ne.s32.totalorder %s840_s29, %s593_s8  ;;  %p595_p8 = pneg %p843_p6 }
  0x11   : > { %s598_s11 = scalar_lea.hbm %s1046_s0, 256  ;;  %p599_p11 = scmp.lt.u32.totalorder %s840_s29, %s1046_s0 }
  0x12   : > { %p596_p9 = pnand %p595_p8, %p594_p7  ;;  %p600_p12 = scmp.lt.u32.totalorder %s598_s11, %s593_s8 }
  0x13   : > { %p602_p1 = scmp.lt.u32.totalorder %s593_s8, %s840_s29 }
  0x14   : > { %p597_p10 = pneg %p596_p9  ;;  %p601_p13 = por %p600_p12, %p599_p11 }
  0x16   : > { %p603_p2 = por %p602_p1, %p601_p13 }
  0x18   : > { %p604_p4 = pnand %p603_p2, %p597_p10 }
  0x1a   : > { %607 = shalt.err (!%p604_p4)
}
  0x1b   : > { %s608_s14 = scalar_lea.vmem %s847_s5, 128  ;;  %s757_s20 = smov [#allocation2]  }
  0x1c   : > { %p609_p5 = scmp.ne.s32.totalorder %s847_s5, %s608_s14  ;;  %s613_s21 = sshll.u32 %s757_s20, 4  ;;  %s614_s21 = int_to_ptr.vmem [resolvable:$false] %s613_s21 }
  0x1d   : > { %s615_s23 = scalar_lea.vmem %s614_s21, 256  ;;  %p616_p3 = scmp.lt.s32.totalorder %s847_s5, %s614_s21 }
  0x1e   : > { %p611_p7 = pnand %p609_p5, %p595_p8  ;;  %p617_p11 = scmp.lt.s32.totalorder %s615_s23, %s608_s14 }
  0x20   : > { %p612_p9 = pneg %p611_p7  ;;  %p618_p12 = por %p617_p11, %p616_p3 }
  0x22   : > { %p619_p13 = pnand %p618_p12, %p612_p9 }
  0x24   : > { %622 = shalt.err (!%p619_p13)
}
  0x25   : > { %541 = dma.hbm_to_vmem [thread:$0]  (!%p843_p6), %s840_s29, 128, %s847_s5, %s849_s7  }
  0x26   : > { %s878_s24 = sadd.s32 4294967295, %s755_s18   ;;  %s483_s27 = sadd.s32 4294967294, %s755_s18  }
  0x27   : > { %p41_p3 = scmp.ne.s32.totalorder %s747_s16, %s743_s15  ;;  %p1051_p10 = scmp.eq.s32.totalorder %s878_s24, 0 }
  0x28   : > { %p133_p1 = scmp.eq.s32.totalorder %s878_s24, 1  ;;  %p139_p2 = scmp.eq.s32.totalorder %s483_s27, 1 }
  0x29   : > { %p887_p4 = por %p1051_p10, %p41_p3  ;;  %p484_p5 = scmp.ge.s32.totalorder %s755_s18, 1 }
  0x2a   : > { %p895_p7 = por %p133_p1, %p35_p0  ;;  %p899_p9 = por %p139_p2, %p41_p3 }
  0x2b   : > { %s1057_s28 = scalar_select %p887_p4, 1, 0 }
  0x2c   : > { %s1058_s29 = scalar_select %p895_p7, 1, 0 }
  0x2d   : > { %s1059_s30 = scalar_select %p899_p9, 1, 0 }
  0x2e   : > { %p146_p11 = scmp.lt.s32.totalorder %s755_s18, 3  ;;  %s758_s8 = smov [#allocation5]  }
  0x2f   : > { %s158_s9 = sshll.u32 %s758_s8, 4  ;;  %s913_s12 = scalar_lea.hbm %s1049_s3, %s488_s26  ;;  %s918_s9 = int_to_ptr.vmem [resolvable:$true] %s158_s9 }
  0x30   : > { %p904_p12 = pnand %p484_p5, %p146_p11  ;;  %s197_s13 = scalar_lea.vmem [#allocation7], %s832_s25 }
  0x31   : > { %s204_s14 = sshll.u32 %s197_s13, 4  ;;  %s623_s21 = scalar_lea.hbm %s913_s12, 128  ;;  %s205_s14 = int_to_ptr.vmem [resolvable:$true] %s204_s14 }
  0x32   : > { %s1060_s5 = scalar_select %p904_p12, 1, 0 }
  0x33   : > { %p534_p0 = pneg %p904_p12  ;;  %p624_p3 = scmp.ne.s32.totalorder %s913_s12, %s623_s21 }
  0x34   : > { %s628_s27 = scalar_lea.hbm %s1049_s3, 256  ;;  %p629_p5 = scmp.lt.u32.totalorder %s913_s12, %s1049_s3 }
  0x35   : > { %p922_p13 = pnand %p534_p0, %p1051_p10  ;;  %p626_p1 = pnand %p624_p3, %p595_p8 }
  0x36   : > { %p630_p11 = scmp.lt.u32.totalorder %s628_s27, %s623_s21  ;;  %p632_p0 = scmp.lt.u32.totalorder %s623_s21, %s913_s12 }
  0x37   : > { %s1061_s20 = scalar_select %p922_p13, 1, 0 }
  0x38   : > { %p627_p2 = pneg %p626_p1  ;;  %p631_p9 = por %p630_p11, %p629_p5 }
  0x3a   : > { %p633_p10 = por %p632_p0, %p631_p9 }
  0x3c   : > { %p634_p7 = pnand %p633_p10, %p627_p2 }
  0x3e   : > { %637 = shalt.err (!%p634_p7)
}
  0x3f   : > { %s638_s10 = scalar_lea.vmem %s205_s14, 128  ;;  %s759_s11 = smov [#allocation7]  }
  0x40   : > { %p639_p4 = scmp.ne.s32.totalorder %s205_s14, %s638_s10  ;;  %s643_s13 = sshll.u32 %s759_s11, 4  ;;  %s644_s13 = int_to_ptr.vmem [resolvable:$false] %s643_s13 }
  0x41   : > { %s645_s26 = scalar_lea.vmem %s644_s13, 256  ;;  %p646_p12 = scmp.lt.s32.totalorder %s205_s14, %s644_s13 }
  0x42   : > { %p641_p3 = pnand %p639_p4, %p595_p8  ;;  %p647_p13 = scmp.lt.s32.totalorder %s645_s26, %s638_s10 }
  0x44   : > { %p642_p1 = pneg %p641_p3  ;;  %p648_p5 = por %p647_p13, %p646_p12 }
  0x46   : > { %p649_p11 = pnand %p648_p5, %p642_p1 }
  0x48   : > { %652 = shalt.err (!%p649_p11)
}
  0x49   : > { %544 = dma.hbm_to_vmem [thread:$0]  (!%p843_p6), %s913_s12, 128, %s205_s14, %s849_s7  }
  0x4a   : > { %s653_s27 = scalar_lea.hbm %s1047_s1, 512  ;;  %p1062_p10 = scmp.ne.s32.totalorder %s1061_s20, 0 }
  0x4b   : > { %p654_p8 = scmp.ne.s32.totalorder %s1047_s1, %s653_s27  ;;  %p660_p12 = scmp.lt.u32.totalorder %s653_s27, %s1047_s1 }
  0x4c   : > { %p655_p4 = pneg %p1062_p10 }
  0x4e   : > { %p656_p7 = pnand %p655_p4, %p654_p8 }
  0x50   : > { %p657_p9 = pneg %p656_p7 }
  0x52   : > { %p662_p13 = pnand %p660_p12, %p657_p9 }
  0x54   : > { %665 = shalt.err (!%p662_p13)
}
  0x55   : > { %s666_s6 = scalar_lea.vmem %s918_s9, 512  ;;  %p674_p3 = scmp.lt.s32.totalorder %s918_s9, %s918_s9 }
  0x56   : > { %p667_p6 = scmp.ne.s32.totalorder %s918_s9, %s666_s6  ;;  %p675_p1 = scmp.lt.s32.totalorder %s666_s6, %s666_s6 }
  0x58   : > { %p669_p2 = pnand %p667_p6, %p655_p4  ;;  %p676_p5 = por %p675_p1, %p674_p3 }
  0x5a   : > { %p670_p0 = pneg %p669_p2 }
  0x5c   : > { %p677_p11 = pnand %p676_p5, %p670_p0 }
  0x5e   : > { %680 = shalt.err (!%p677_p11)
}
  0x5f   : > { %s760_s7 = smov 128   ;;  %s761_s12 = smov 8  }
  0x60   : > { %537 = dma.hbm_to_vmem [thread:$0]  (!%p1062_p10), %s1047_s1, 512, %s918_s9, [#allocation6], %s760_s7, %s760_s7, %s761_s12  }
  0x61   : > { %p1063_p8 = scmp.ne.s32.totalorder %s1060_s5, 0 }
  0x62   : > { %s215_s26 = sand.u32 (!%p1063_p8), 1, %s878_s24   ;;  %s217_s21 = sand.u32 (!%p1063_p8), 1, %s747_s16  }
  0x63   : > { %213 = sbr.rel (%p1063_p8) target bundleno = 476 (0x1dc), region = 36  ;;  %s973_s23 = sshll.u32 (!%p1063_p8), %s217_s21, 3 }
  0x64   : > { %s216_s27 = scalar_lea.sflag (!%p1063_p8), [#allocation3], %s215_s26  ;;  %s219_s25 = scalar_lea.vmem (!%p1063_p8), [#allocation2], %s973_s23 }
  0x65   : > { %p1064_p4 = scmp.ne.s32.totalorder (!%p1063_p8), %s1057_s28, 0 }
  0x6a   : > { %726 = dma.done.wait (%p1064_p4), %s216_s27, 128  }
  0x6b   : > { %728 = vsyncadd (%p1064_p4), %s216_s27, 4294967168  ;;  %p1065_p10 = scmp.eq.s32.totalorder %s878_s24, 0 }
  0x6d   : > { %730 = dma.done.wait (%p1065_p10), [#allocation6], 512   ;;  %p1066_p7 = pmov %p1065_p10 }
  0x6e   : > { %s232_s5 = scalar_lea.vmem [#allocation7], %s973_s23 }
  0x6f   : > { %732 = vsyncadd (%p1066_p7), [#allocation6], 4294966784 }
  0x70   : > { %734 = dma.done.wait (%p1064_p4), %s216_s27, 128  }
  0x71   : > { %736 = vsyncadd (%p1064_p4), %s216_s27, 4294967168  ;;  %v762_v0 = vmov 0.0|0.0   ;;  %vm763_vm0 = vmmov 0   ;;  %v764_v1 = vmov 0.0   ;;  %v263_v2 = vld [vmem:[#allocation5] sm:$0xff]  ;;  %v264_v3 = vld [vmem:[#allocation5 + $0x8] sm:$0xff] }
  0x72   : > { %518 = vmatprep.subr.bf16.mxu0 %v762_v0  ;;  %515 = vmatprep.mubr.msk.f32.mxu0 %vm763_vm0, %v764_v1  ;;  %v265_v4 = vld [vmem:[#allocation5 + $0x10] sm:$0xff]  ;;  %v519_v5 = vpack.c.bf16 %v264_v3, %v263_v2  ;;  %v266_v6 = vld [vmem:[#allocation5 + $0x18] sm:$0xff]  ;;  %vm274_vm1 = vcmask 261120   ;;  %s765_s20 = smov 32   ;;  %s766_s8 = smov 96   ;;  %v350_v15 = vld [vmem:[%s232_s5] sm:$0xff] }
  0x73   : > { %v522_v7 = vpack.c.bf16 %v266_v6, %v265_v4  ;;  %v262_v8 = vld [vmem:[%s219_s25] sm:$0xff]  ;;  %s499_s10 = sshll.u32 %s878_s24, 7  ;;  %s261_s11 = scalar_lea.vmem [#allocation8], %s973_s23  ;;  %vm362_vm2 = vcmask 523520   ;;  %vm367_vm3 = vcmask 785920  }
  0x74   : > { %520 = vmatpush3.bf16.msra.mxu0 %v519_v5  ;;  %v496_v9 = vld [vmem:[%s1048_s2] ss:$0 sm:$0xff]  ;;  %s383_s6 = sshll.u32 %s261_s11, 4  ;;  %s1001_s14 = scalar_lea.hbm %s1050_s4, %s499_s10  ;;  %s1003_s6 = int_to_ptr.vmem [resolvable:$true] %s383_s6 }
  0x75   : > { %521 = vmatprep.subr.bf16.mxu0 %v762_v0  ;;  %s370_s24 = scalar_lea.sflag [#allocation4], %s217_s21  ;;  %s681_s13 = scalar_lea.vmem %s1003_s6, 128 }
  0x76   : > { %p682_p9 = scmp.ne.s32.totalorder %s1003_s6, %s681_s13  ;;  %p1067_p12 = scmp.ne.s32.totalorder %s1058_s29, 0 }
  0x77   : > { %s767_s26 = smov [#allocation8]  }
  0x78   : > { %523 = vmatpush3.bf16.msra.mxu0 %v522_v7  ;;  %p683_p13 = pnand %p682_p9, %p1067_p12  ;;  %s685_s23 = sshll.u32 %s767_s26, 4  ;;  %s686_s23 = int_to_ptr.vmem [resolvable:$false] %s685_s23 }
  0x79   : > { %s687_s27 = scalar_lea.vmem %s686_s23, 256  ;;  %p688_p2 = scmp.lt.s32.totalorder %s1003_s6, %s686_s23 }
  0x7a   : > { %p684_p6 = pneg %p683_p13  ;;  %p689_p0 = scmp.lt.s32.totalorder %s687_s27, %s681_s13 }
  0x7b   : > { %516 = vmatmul.mubr.msk.f32.vlgmr.msra.gmra.mrb[0].mxu0 %vm274_vm1, %v262_v8 }
  0x7c   : > { %p690_p3 = por %p689_p0, %p688_p2 }
  0x7e   : > { %p691_p1 = pnand %p690_p3, %p684_p6 }
 0x14e   : > { %v344_v10 = vpop.f32.mrb[0].mxu0 }
 0x14f   : > { %v345_v11 = vadd.f32 %v496_v9, %v344_v10  ;;  %v517_v12 = vpop.f32.mrb[1].mxu0 }
 0x151   : > { %v348_v13 = vmax.f32 %v345_v11, 0.0 }
 0x153   : > { %v349_v14 = vadd.f32 1e-12, %v348_v13 }
 0x155   : > { %364 = vrot.lane.b32.xlu1 %v349_v14, %s765_s20  ;;  %352 = vrot.lane.b32.xlu0 %v349_v14, %s766_s8 }
 0x159   : > { %359 = vrot.lane.b32.xlu0 %v345_v11, %s765_s20 }
 0x1c7   : > { %v353_v16 = vpop.permute.xlu0 %352  ;;  %v365_v20 = vpop.permute.xlu1 %364 }
 0x1c8   : > { %v355_v17 = vmul.f32 %v353_v16, %v350_v15 }
 0x1ca   : > { %v356_v18 = vadd.f32 %v355_v17, %v345_v11 }
 0x1cb   : > { %v360_v19 = vpop.permute.xlu0 %359 }
 0x1cc   : > { %357 = vst.msk [vmem:[%s261_s11] sm:$0xff] %vm274_vm1, %v356_v18 }
 0x1cd   : > { %363 = vst.msk [vmem:[%s261_s11] sm:$0xff] %vm362_vm2, %v360_v19 }
 0x1ce   : > { %368 = vst.msk [vmem:[%s261_s11] sm:$0xff] %vm367_vm3, %v365_v20 }
 0x1cf   : > { %694 = shalt.err (!%p691_p1)
}
 0x1d0   : > { %s695_s21 = scalar_lea.hbm %s1001_s14, 128  ;;  %s699_s28 = scalar_lea.hbm %s1050_s4, 256 }
 0x1d1   : > { %p696_p5 = scmp.ne.s32.totalorder %s1001_s14, %s695_s21  ;;  %p700_p4 = scmp.lt.u32.totalorder %s1001_s14, %s1050_s4 }
 0x1d2   : > { %p701_p10 = scmp.lt.u32.totalorder %s699_s28, %s695_s21  ;;  %p703_p9 = scmp.lt.u32.totalorder %s695_s21, %s1001_s14 }
 0x1d3   : > { %p697_p11 = pnand %p696_p5, %p1067_p12 }
 0x1d4   : > { %p702_p7 = por %p701_p10, %p700_p4 }
 0x1d5   : > { %p698_p8 = pneg %p697_p11 }
 0x1d6   : > { %p704_p13 = por %p703_p9, %p702_p7 }
 0x1d8   : > { %p705_p6 = pnand %p704_p13, %p698_p8 }
 0x1da   : > { %708 = shalt.err (!%p705_p6)
}
 0x1db   : > { %532 = dma.vmem_to_hbm [thread:$0]  (%p1067_p12), %s1003_s6, 128, %s1001_s14, %s370_s24  }
 0x1dc PF: > { %s395_s8 = sand.u32 1, %s743_s15   ;;  %p1068_p2 = scmp.ne.s32.totalorder %s1059_s30, 0 }
 0x1dd   : > { %p1069_p0 = scmp.ge.s32.totalorder %s755_s18, 2  ;;  %s396_s10 = scalar_lea.sflag [#allocation4], %s395_s8 }
 0x1df   : > { %p546_p3 = pnand %p1069_p0, %p1068_p2 }
 0x1e1   : > { %738 = dma.done.wait (!%p546_p3), %s396_s10, 128  }
 0x1e2   : > { %740 = vsyncadd (!%p546_p3), %s396_s10, 4294967168  ;;  %p18_p1 = scmp.ge.s32.totalorder %s814_s19, 4   ;;  %s1070_s15 = smov %s747_s16 }
 0x1e3   : > { %s1071_s16 = smov %s751_s17  ;;  %s1072_s17 = smov %s825_s22 }
 0x1e4   : > { %s1073_s18 = smov %s814_s19  ;;  %20 = sbr.rel (!%p18_p1) target bundleno = 6 (0x6), region = 96 }
 0x1eb   :  { %401 = vsyncpa [#allocation3], 1 }
 0x1ec   :  { %403 = vsyncpa [#allocation3 + $0x1], 1 }
 0x1ed   :  { %404 = vsyncpa [#allocation6], 1 }
 0x1ee   :  { %405 = vsyncpa [#allocation4], 1 }
 0x1ef   :  { %407 = vsyncpa [#allocation4 + $0x1], 1 }

</bundles_post_ra>
